<compile_context>
chip_gen: v7x
topology: tpu7x:2x2x1
jax: 0.10.0
libtpu: 0.0.40
codegen_flags: <defaults>
</compile_context>

<pallas_src>
import math

import jax
import jax.numpy as jnp
from jax.experimental import pallas as pl
from jax.experimental.pallas import tpu as pltpu

BN_EPS = 1e-5


def _row_block(m, target):
    """Largest divisor of m that is <= target and a multiple of 8 (or m)."""
    for t in range(min(m, target), 0, -1):
        if m % t == 0 and (t % 8 == 0 or t == m):
            return t
    return m


# ---------------------------------------------------------------------------
# Pass A: squeeze 1x1 conv (bf16 MXU) + per-tile channel statistics.
# ---------------------------------------------------------------------------
def squeeze_kernel(x_ref, ws_ref, bs_ref, s_ref, ssum_ref, ssq_ref):
    cs = ws_ref.shape[1]
    s = jnp.dot(x_ref[...], ws_ref[...],
                preferred_element_type=jnp.float32) + bs_ref[...]
    s_ref[...] = s
    ssum_ref[...] = jnp.sum(s, axis=0, keepdims=True).reshape(1, 1, cs)
    ssq_ref[...] = jnp.sum(s * s, axis=0, keepdims=True).reshape(1, 1, cs)


# ---------------------------------------------------------------------------
# Pass B: squeeze BN+ReLU, bf16 im2col, fused [expand1x1 | expand3x3] matmul,
#         per-image channel statistics.
# ---------------------------------------------------------------------------
def expand_kernel(s_ref, sscale_ref, sshift_ref, we_ref, be_ref,
                  e_ref, esum_ref, esq_ref, spad_ref, cols_ref):
    _, H, W, Cs = s_ref.shape
    C2 = we_ref.shape[1]
    HW = H * W

    # Squeeze BN (pre-folded scale/shift) + ReLU; single cast to bf16.
    s = jnp.maximum(s_ref[...] * sscale_ref[...] + sshift_ref[...], 0.0)
    s = s.astype(jnp.bfloat16)

    # Zero-padded squeeze slab in bf16: interior once, halo-only zeros.
    spad_ref[:, 1:H + 1, 1:W + 1, :] = s
    spad_ref[:, 0:1, :, :] = jnp.zeros((1, 1, W + 2, Cs), jnp.bfloat16)
    spad_ref[:, H + 1:H + 2, :, :] = jnp.zeros((1, 1, W + 2, Cs), jnp.bfloat16)
    spad_ref[:, 1:H + 1, 0:1, :] = jnp.zeros((1, H, 1, Cs), jnp.bfloat16)
    spad_ref[:, 1:H + 1, W + 1:W + 2, :] = jnp.zeros((1, H, 1, Cs), jnp.bfloat16)

    # im2col: 9 shifted windows -> (HW, 9*Cs) bf16 tap buffer.
    for ky in range(3):
        for kx in range(3):
            t = ky * 3 + kx
            cols_ref[:, :, :, t * Cs:(t + 1) * Cs] = \
                spad_ref[:, ky:ky + H, kx:kx + W, :]

    taps = cols_ref[...].reshape(HW, 9 * Cs)

    # One MXU matmul produces the already-concatenated [e1 | e3] slab.
    e = jnp.dot(taps, we_ref[...],
                preferred_element_type=jnp.float32) + be_ref[...]

    e_ref[...] = e.reshape(1, H, W, C2)
    esum_ref[...] = jnp.sum(e, axis=0, keepdims=True).reshape(1, 1, C2)
    esq_ref[...] = jnp.sum(e * e, axis=0, keepdims=True).reshape(1, 1, C2)


# ---------------------------------------------------------------------------
# Pass C: expand BN scale/shift + final ReLU (lane-dense store when 2*Ce>=128).
# ---------------------------------------------------------------------------
def finalize_kernel(e_ref, scale_ref, shift_ref, o_ref):
    o_ref[...] = jnp.maximum(e_ref[...] * scale_ref[...] + shift_ref[...], 0.0)


def fire_forward(x_nchw, params, *, row_block=256):
    """Pallas Fire forward. x_nchw: (N, Cin, H, W) -> (N, 2*Ce, H, W) float32.

    row_block: M-row tile for the elementwise/matmul passes.  Raise toward
    512-1024 on v5e/v6e (128 MiB VMEM); keep moderate on v7x (64 MiB).
    """
    ws, bs, gs, bts, w1, b1, g1, bt1, w3t, b3, g3, bt3 = params
    N, Cin, H, W = x_nchw.shape
    Cs = ws.shape[1]
    Ce = w1.shape[1]
    C2 = 2 * Ce                  # lane-dense final store when C2 % 128 == 0
    M = N * H * W

    # Input cast to bf16 BEFORE the layout change (half the transpose bytes).
    x2d = jnp.transpose(x_nchw.astype(jnp.bfloat16), (0, 2, 3, 1)).reshape(M, Cin)
    ws_bf = ws.astype(jnp.bfloat16)

    # Fused expand weight (9*Cs, 2*Ce): expand1x1 packed into center-tap rows.
    w_e1 = jnp.zeros((9, Cs, Ce), jnp.float32).at[4].set(w1).reshape(9 * Cs, Ce)
    w_e3 = w3t.reshape(9 * Cs, Ce)
    we = jnp.concatenate([w_e1, w_e3], axis=1).astype(jnp.bfloat16)
    be = jnp.concatenate([b1, b3], axis=1)
    ge = jnp.concatenate([g1, g3], axis=1)
    bte = jnp.concatenate([bt1, bt3], axis=1)

    # --------------------- Pass A: squeeze conv + stats ---------------------
    tm = _row_block(M, row_block)
    nta = M // tm
    s_raw, ssum, ssq = pl.pallas_call(
        squeeze_kernel,
        out_shape=(jax.ShapeDtypeStruct((M, Cs), jnp.float32),
                   jax.ShapeDtypeStruct((nta, 1, Cs), jnp.float32),
                   jax.ShapeDtypeStruct((nta, 1, Cs), jnp.float32)),
        grid=(nta,),
        in_specs=[pl.BlockSpec((tm, Cin), lambda i: (i, 0)),
                  pl.BlockSpec((Cin, Cs), lambda i: (0, 0)),     # resident
                  pl.BlockSpec((1, Cs), lambda i: (0, 0))],      # resident
        out_specs=(pl.BlockSpec((tm, Cs), lambda i: (i, 0)),
                   pl.BlockSpec((1, 1, Cs), lambda i: (i, 0, 0)),
                   pl.BlockSpec((1, 1, Cs), lambda i: (i, 0, 0))),
        compiler_params=pltpu.CompilerParams(
            dimension_semantics=("parallel",)),
    )(x2d, ws_bf, bs)

    inv_m = jnp.float32(1.0 / M)
    mean_s = jnp.sum(ssum, axis=0) * inv_m                      # (1, Cs)
    var_s = jnp.sum(ssq, axis=0) * inv_m - mean_s * mean_s
    scale_s = gs * jax.lax.rsqrt(var_s + BN_EPS)
    shift_s = bts - mean_s * scale_s

    # ------------- Pass B: BN+ReLU, im2col, fused expand matmul -------------
    s_nhwc = s_raw.reshape(N, H, W, Cs)
    e_raw, esum, esq = pl.pallas_call(
        expand_kernel,
        out_shape=(jax.ShapeDtypeStruct((N, H, W, C2), jnp.float32),
                   jax.ShapeDtypeStruct((N, 1, C2), jnp.float32),
                   jax.ShapeDtypeStruct((N, 1, C2), jnp.float32)),
        grid=(N,),
        in_specs=[pl.BlockSpec((1, H, W, Cs), lambda n: (n, 0, 0, 0)),
                  pl.BlockSpec((1, Cs), lambda n: (0, 0)),       # resident
                  pl.BlockSpec((1, Cs), lambda n: (0, 0)),       # resident
                  pl.BlockSpec((9 * Cs, C2), lambda n: (0, 0)),  # resident
                  pl.BlockSpec((1, C2), lambda n: (0, 0))],      # resident
        out_specs=(pl.BlockSpec((1, H, W, C2), lambda n: (n, 0, 0, 0)),
                   pl.BlockSpec((1, 1, C2), lambda n: (n, 0, 0)),
                   pl.BlockSpec((1, 1, C2), lambda n: (n, 0, 0))),
        scratch_shapes=[
            pltpu.VMEM((1, H + 2, W + 2, Cs), jnp.bfloat16),  # padded squeeze
            pltpu.VMEM((1, H, W, 9 * Cs), jnp.bfloat16),      # im2col taps
        ],
        compiler_params=pltpu.CompilerParams(
            dimension_semantics=("parallel",)),
    )(s_nhwc, scale_s, shift_s, we, be)

    mean_e = jnp.sum(esum, axis=0) * inv_m                      # (1, C2)
    var_e = jnp.sum(esq, axis=0) * inv_m - mean_e * mean_e
    scale_e = ge * jax.lax.rsqrt(var_e + BN_EPS)
    shift_e = bte - mean_e * scale_e

    # ------------------ Pass C: expand BN + final ReLU ----------------------
    tmc = _row_block(M, row_block)
    e2d = e_raw.reshape(M, C2)
    out2d = pl.pallas_call(
        finalize_kernel,
        out_shape=jax.ShapeDtypeStruct((M, C2), jnp.float32),
        grid=(M // tmc,),
        in_specs=[pl.BlockSpec((tmc, C2), lambda i: (i, 0)),
                  pl.BlockSpec((1, C2), lambda i: (0, 0)),       # resident
                  pl.BlockSpec((1, C2), lambda i: (0, 0))],      # resident
        out_specs=pl.BlockSpec((tmc, C2), lambda i: (i, 0)),
        compiler_params=pltpu.CompilerParams(
            dimension_semantics=("parallel",)),
    )(e2d, scale_e, shift_e)

    # TODO(synk): wrapper transpose back to NCHW; fold into the kernel (or keep
    # NHWC in the surrounding model) to avoid this extra HBM round trip.
    return jnp.transpose(out2d.reshape(N, H, W, C2), (0, 3, 1, 2))


def init_params(key, cin, cs, ce):
    """Deterministic init matching the PyTorch module's __init__ shapes.

    Conv weights ~ N(0, sqrt(2/n)) with n = kh*kw*in_channels; conv biases use
    the PyTorch default uniform; BatchNorm default init (gamma=1, beta=0).
    """
    k0, k1, k2, k3, k4, k5 = jax.random.split(key, 6)
    f32 = jnp.float32

    w_sq = jax.random.normal(k0, (cs, cin), f32) * math.sqrt(2.0 / cin)
    ws = w_sq.T
    bs = jax.random.uniform(k1, (1, cs), f32, -1.0, 1.0) / math.sqrt(cin)

    w_e1 = jax.random.normal(k2, (ce, cs), f32) * math.sqrt(2.0 / cs)
    w1 = w_e1.T
    b1 = jax.random.uniform(k3, (1, ce), f32, -1.0, 1.0) / math.sqrt(cs)

    w_e3 = jax.random.normal(k4, (ce, cs, 3, 3), f32) * math.sqrt(2.0 / (9 * cs))
    w3t = jnp.transpose(w_e3, (2, 3, 1, 0)).reshape(9, cs, ce)
    b3 = jax.random.uniform(k5, (1, ce), f32, -1.0, 1.0) / math.sqrt(9 * cs)

    gs, bts = jnp.ones((1, cs), f32), jnp.zeros((1, cs), f32)
    g1, bt1 = jnp.ones((1, ce), f32), jnp.zeros((1, ce), f32)
    g3, bt3 = jnp.ones((1, ce), f32), jnp.zeros((1, ce), f32)

    return (ws, bs, gs, bts, w1, b1, g1, bt1, w3t, b3, g3, bt3)


def ref_fire(x_nchw, params):
    """Pure-JAX reference (lax.conv + training-mode BN) for correctness check.

    Uses bf16 matmul inputs / f32 accumulation like the kernel so the
    comparison isolates kernel structure rather than dtype choice.
    """
    ws, bs, gs, bts, w1, b1, g1, bt1, w3t, b3, g3, bt3 = params
    x = jnp.transpose(x_nchw, (0, 2, 3, 1)).astype(jnp.float32)
    cin, cs = ws.shape
    ce = w1.shape[1]
    dn = ("NHWC", "HWIO", "NHWC")
    bf = jnp.bfloat16

    def conv(inp, w, pad):
        return jax.lax.conv_general_dilated(
            inp.astype(bf), w.astype(bf), (1, 1), pad,
            dimension_numbers=dn, preferred_element_type=jnp.float32)

    def bn(y, g, b):
        mean = jnp.mean(y, axis=(0, 1, 2), keepdims=True)
        var = jnp.mean(jnp.square(y - mean), axis=(0, 1, 2), keepdims=True)
        return (y - mean) * jax.lax.rsqrt(var + BN_EPS) * g.reshape(1, 1, 1, -1) \
            + b.reshape(1, 1, 1, -1)

    s = conv(x, ws.reshape(1, 1, cin, cs), "VALID") + bs.reshape(1, 1, 1, -1)
    s = jnp.maximum(bn(s, gs, bts), 0.0)

    e1 = conv(s, w1.reshape(1, 1, cs, ce), "VALID") + b1.reshape(1, 1, 1, -1)
    e1 = bn(e1, g1, bt1)

    e3 = conv(s, w3t.reshape(3, 3, cs, ce), "SAME") + b3.reshape(1, 1, 1, -1)
    e3 = bn(e3, g3, bt3)

    out = jnp.maximum(jnp.concatenate([e1, e3], axis=-1), 0.0)
    return jnp.transpose(out, (0, 3, 1, 2))


if __name__ == "__main__":
    N, Cin, H, W = 2, 4, 16, 16
    Cs, Ce = 16, 64  # squeeze_channel, expand_channel (2*Ce = 128 -> lane-dense)

    key = jax.random.PRNGKey(0)
    kx, kp = jax.random.split(key)
    x = jax.random.normal(kx, (N, Cin, H, W), jnp.float32)
    params = init_params(kp, Cin, Cs, Ce)

    y = jax.block_until_ready(fire_forward(x, params))
    assert y.shape == (N, 2 * Ce, H, W), y.shape

    y_ref = jax.block_until_ready(ref_fire(x, params))
    max_err = float(jnp.max(jnp.abs(y - y_ref)))
    # Both paths use bf16 matmul inputs with f32 accumulation; the residual
    # difference is accumulation order + occasional bf16 re-rounding.
    assert max_err < 1e-2, f"max abs error vs reference: {max_err}"

    print("KERNEL_OK")
</pallas_src>

<mosaic_0001>
module attributes {stable_mosaic.version = 11 : i64} {
  func.func @squeeze_kernel(%arg0: i32, %arg1: memref<256x4xbf16, #tpu.memory_space<vmem>>, %arg2: memref<4x16xbf16, #tpu.memory_space<vmem>>, %arg3: memref<1x16xf32, #tpu.memory_space<vmem>>, %arg4: memref<256x16xf32, #tpu.memory_space<vmem>>, %arg5: memref<1x1x16xf32, #tpu.memory_space<vmem>>, %arg6: memref<1x1x16xf32, #tpu.memory_space<vmem>>) attributes {dimension_semantics = [#tpu.dimension_semantics<parallel>], iteration_bounds = array<i64: 2>, scalar_prefetch = 0 : i64, scratch_operands = 0 : i64, tpu.core_type = #tpu.core_type<tc>, window_params = [{transform_indices = @transform_0, window_bounds = array<i64: 256, 4>}, {pipeline_mode = #tpu.pipeline_mode<synchronous>, transform_indices = @transform_1, window_bounds = array<i64: 4, 16>}, {pipeline_mode = #tpu.pipeline_mode<synchronous>, transform_indices = @transform_2, window_bounds = array<i64: 1, 16>}, {transform_indices = @transform_3, window_bounds = array<i64: 256, 16>}, {transform_indices = @transform_4, window_bounds = array<i64: 1, 1, 16>}, {transform_indices = @transform_5, window_bounds = array<i64: 1, 1, 16>}]} {
    %c0 = arith.constant 0 : index
    %c0_0 = arith.constant 0 : index
    %0 = vector.load %arg1[%c0, %c0_0] : memref<256x4xbf16, #tpu.memory_space<vmem>>, vector<256x4xbf16>
    %c0_1 = arith.constant 0 : index
    %c0_2 = arith.constant 0 : index
    %1 = vector.load %arg2[%c0_1, %c0_2] : memref<4x16xbf16, #tpu.memory_space<vmem>>, vector<4x16xbf16>
    %cst = arith.constant dense<0.000000e+00> : vector<256x16xf32>
    %2 = tpu.matmul %0, %1, %cst {dimension_numbers = #tpu.dot_dimension_numbers<[1], [0], [0], [1], [0, 0, 1, 1], [], []>} : vector<256x4xbf16>, vector<4x16xbf16>, vector<256x16xf32> -> vector<256x16xf32>
    %c0_3 = arith.constant 0 : index
    %c0_4 = arith.constant 0 : index
    %3 = vector.load %arg3[%c0_3, %c0_4] : memref<1x16xf32, #tpu.memory_space<vmem>>, vector<1x16xf32>
    %4 = vector.broadcast %3 : vector<1x16xf32> to vector<256x16xf32>
    %5 = arith.addf %2, %4 : vector<256x16xf32>
    %c0_5 = arith.constant 0 : index
    %c0_6 = arith.constant 0 : index
    %6 = vector.load %arg4[%c0_5, %c0_6] : memref<256x16xf32, #tpu.memory_space<vmem>>, vector<256x16xf32>
    tpu.vector_store %arg4[%c0_5, %c0_6], %5 {strides = array<i32>} : memref<256x16xf32, #tpu.memory_space<vmem>>, vector<256x16xf32>,
    %cst_7 = arith.constant dense<0.000000e+00> : vector<16xf32>
    %7 = vector.multi_reduction <add>, %5, %cst_7 [0] : vector<256x16xf32> to vector<16xf32>
    %8 = vector.shape_cast %7 : vector<16xf32> to vector<1x16xf32>
    %9 = vector.shape_cast %8 : vector<1x16xf32> to vector<1x1x16xf32>
    %c0_8 = arith.constant 0 : index
    %c0_9 = arith.constant 0 : index
    %c0_10 = arith.constant 0 : index
    %10 = vector.load %arg5[%c0_8, %c0_9, %c0_10] : memref<1x1x16xf32, #tpu.memory_space<vmem>>, vector<1x1x16xf32>
    tpu.vector_store %arg5[%c0_8, %c0_9, %c0_10], %9 {strides = array<i32>} : memref<1x1x16xf32, #tpu.memory_space<vmem>>, vector<1x1x16xf32>,
    %11 = arith.mulf %5, %5 : vector<256x16xf32>
    %cst_11 = arith.constant dense<0.000000e+00> : vector<16xf32>
    %12 = vector.multi_reduction <add>, %11, %cst_11 [0] : vector<256x16xf32> to vector<16xf32>
    %13 = vector.shape_cast %12 : vector<16xf32> to vector<1x16xf32>
    %14 = vector.shape_cast %13 : vector<1x16xf32> to vector<1x1x16xf32>
    %c0_12 = arith.constant 0 : index
    %c0_13 = arith.constant 0 : index
    %c0_14 = arith.constant 0 : index
    %15 = vector.load %arg6[%c0_12, %c0_13, %c0_14] : memref<1x1x16xf32, #tpu.memory_space<vmem>>, vector<1x1x16xf32>
    tpu.vector_store %arg6[%c0_12, %c0_13, %c0_14], %14 {strides = array<i32>} : memref<1x1x16xf32, #tpu.memory_space<vmem>>, vector<1x1x16xf32>,
    return
  }
  func.func @transform_0(%arg0: i32) -> (i32, i32) {
    %c0_i32 = arith.constant 0 : i32
    %c0_i32_0 = arith.constant 0 : i32
    return %arg0, %c0_i32 : i32, i32
  }
  func.func @transform_1(%arg0: i32) -> (i32, i32) {
    %c0_i32 = arith.constant 0 : i32
    %c0_i32_0 = arith.constant 0 : i32
    %c0_i32_1 = arith.constant 0 : i32
    return %c0_i32, %c0_i32_0 : i32, i32
  }
  func.func @transform_2(%arg0: i32) -> (i32, i32) {
    %c0_i32 = arith.constant 0 : i32
    %c0_i32_0 = arith.constant 0 : i32
    %c0_i32_1 = arith.constant 0 : i32
    return %c0_i32, %c0_i32_0 : i32, i32
  }
  func.func @transform_3(%arg0: i32) -> (i32, i32) {
    %c0_i32 = arith.constant 0 : i32
    %c0_i32_0 = arith.constant 0 : i32
    return %arg0, %c0_i32 : i32, i32
  }
  func.func @transform_4(%arg0: i32) -> (i32, i32, i32) {
    %c0_i32 = arith.constant 0 : i32
    %c0_i32_0 = arith.constant 0 : i32
    %c0_i32_1 = arith.constant 0 : i32
    return %arg0, %c0_i32, %c0_i32_0 : i32, i32, i32
  }
  func.func @transform_5(%arg0: i32) -> (i32, i32, i32) {
    %c0_i32 = arith.constant 0 : i32
    %c0_i32_0 = arith.constant 0 : i32
    %c0_i32_1 = arith.constant 0 : i32
    return %arg0, %c0_i32, %c0_i32_0 : i32, i32, i32
  }
}

</mosaic_0001>

<bundles_post_ra>
// kernel: tpu_custom_call.1
= control target key start
LH: loop header
LB: loop body
LE: loop exit
PB: predicated region body
PF: predicated region fallthrough
CT: control target
= control target key end

     0   :  { %11 = vsyncpa [#allocation3], 0  ;;  %s1639_s0 = inlined_call_operand.vmem [shape: bf16[512,4], index: 0, kind: input, shape index: {}]   ;;  %s1640_s1 = inlined_call_operand.vmem [shape: bf16[4,16], index: 1, kind: input, shape index: {}]   ;;  %s1641_s2 = inlined_call_operand.vmem [shape: f32[1,16], index: 2, kind: input, shape index: {}]   ;;  %s1642_s3 = inlined_call_operand.vmem [shape: f32[512,16], index: 3, kind: output, shape index: {0}]   ;;  %s1643_s4 = inlined_call_operand.hbm [shape: f32[2,1,16], index: 4, kind: output, shape index: {1}]   ;;  %s1644_s5 = inlined_call_operand.hbm [shape: f32[2,1,16], index: 5, kind: output, shape index: {2}]  }
   0x1   :  { %13 = vsyncpa [#allocation3 + $0x1], 0 }
   0x2   :  { %14 = vsyncpa [#allocation5], 0 }
   0x3   :  { %16 = vsyncpa [#allocation5 + $0x1], 0  ;;  %s1223_s18 = smov 0   ;;  %s1225_s19 = smov 0  }
   0x4   :  { %s1227_s20 = smov 0   ;;  %s1229_s21 = smov 0  }
   0x5 LB: > { %s1244_s22 = sadd.s32 4294967295, %s1189_s21   ;;  %s935_s23 = sadd.s32 4294967294, %s1189_s21   ;;  %s1189_s21 = sphi %s1229_s21, %s1650_s21   ;;  %s1185_s20 = sphi %s1227_s20, %s1649_s20   ;;  %s1181_s19 = sphi %s1225_s19, %s1648_s19   ;;  %s1177_s18 = sphi %s1223_s18, %s1647_s18  }
   0x6   : > { %s1248_s24 = sadd.s32 1, %s1189_s21   ;;  %s123_s25 = sadd.s32 1, %s1185_s20 }
   0x7   : > { %s120_s26 = ssub.s32 %s1189_s21, %s1248_s24  ;;  %p133_p0 = scmp.ne.s32.totalorder %s1185_s20, %s1181_s19 }
   0x8   : > { %p121_p1 = scmp.eq.s32.totalorder %s120_s26, 0  ;;  %p134_p2 = scmp.eq.s32.totalorder %s1244_s22, 1 }
   0x9   : > { %p139_p3 = scmp.ne.s32.totalorder %s1181_s19, %s1177_s18  ;;  %p140_p4 = scmp.eq.s32.totalorder %s935_s23, 1 }
   0xa   : > { %s1259_s27 = scalar_select %p121_p1, %s1185_s20, %s123_s25  }
   0xb   : > { %p1261_p5 = por %p134_p2, %p133_p0  ;;  %p1265_p6 = por %p140_p4, %p139_p3 }
   0xc   : > { %p938_p7 = scmp.ge.s32.totalorder %s1189_s21, 1  ;;  %p199_p8 = scmp.lt.s32.totalorder %s1189_s21, 3 }
   0xe   : > { %p200_p9 = pnand %p938_p7, %p199_p8 }
   0xf   : > { %v280_v0 = vld [vmem:[%s1640_s1] sm:$0x3] (!%p200_p9)  ;;  %vm417_vm0 = vcmask (!%p200_p9), 1041408   ;;  %s939_s7 = sshll.u32 (!%p200_p9), %s1244_s22, 5  ;;  %vm368_vm1 = vcmask (!%p200_p9), 31744   ;;  %vm582_vm2 = vcmask (!%p200_p9), 130048  }
  0x10   : > { %203 = sbr.rel (%p200_p9) target bundleno = 357 (0x165), region = 32  ;;  %1033 = vmatprep.subr.msk.bf16.mxu0 (!%p200_p9), %vm417_vm0, %v280_v0  ;;  %v419_v1 = vsel (!%p200_p9), %vm417_vm0, %v280_v0, 0  ;;  %p236_p10 = scmp.lt.s32.totalorder (!%p200_p9), %s939_s7, 63  ;;  %1034 = vmatprep.subr.msk.bf16.mxu1 (!%p200_p9), %vm417_vm0, %v280_v0  ;;  %v1319_v18 = vld [vmem:[%s1641_s2] ss:$0 sm:$0xff] (!%p200_p9)  ;;  %vm684_vm3 = vcmask (!%p200_p9), 122880  }
  0x11   : > { %998 = vmatpush3.bf16.msra.mxu0 (!%p200_p9), %v419_v1  ;;  %1032 = vmatpush3.bf16.msra.mxu1 (!%p200_p9), %v419_v1  ;;  %s1553_s23 = sand.u32 (!%p200_p9), 1, %s1181_s19   ;;  %s976_s25 = sshll.u32 (!%p200_p9), %s1244_s22, 4 }
  0x12   : > { %s228_s26 = scalar_lea.vmem (!%p200_p9), [#allocation2], %s1553_s23  ;;  %s234_s6 = scalar_lea.vmem (!%p200_p9), [#allocation4], %s1553_s23 }
  0x13   : > { %s814_s30 = sshll.u32 (!%p200_p9), %s228_s26, 4  ;;  %s1563_s10 = scalar_lea.hbm (!%p200_p9), %s1643_s4, %s976_s25  ;;  %s1565_s30 = int_to_ptr.vmem [resolvable:$true] %s814_s30 }
  0x14   : > { %s794_s13 = scalar_lea.sflag (!%p200_p9), [#allocation3], %s1553_s23  ;;  %s1095_s14 = scalar_lea.vmem (!%p200_p9), %s1565_s30, 16 }
  0x15   : > { %p1096_p11 = scmp.ne.s32.totalorder (!%p200_p9), %s1565_s30, %s1095_s14  ;;  %s1191_s15 = smov (!%p200_p9), [#allocation2]  }
  0x16   : > { %s1099_s16 = sshll.u32 (!%p200_p9), %s1191_s15, 4  ;;  %s1100_s16 = int_to_ptr.vmem [resolvable:$false] %s1099_s16 }
  0x17   : > { %s1652_s7 = smov (!%p236_p10, %s939_s7), 63  ;;  %p1097_p12 = pnand %p1096_p11, %p1261_p5 }
  0x18   : > { %s940_s8 = sshll.u32 %s1652_s7, 2  ;;  %s942_s12 = sshll.u32 %s1652_s7, 3 }
  0x19   : > { %s1281_s11 = scalar_lea.vmem %s1639_s0, %s940_s8  ;;  %s1324_s17 = scalar_lea.vmem %s1642_s3, %s942_s12 }
  0x1a   : > { %v1079_v2 = vld [vmem:[%s1281_s11] sm:$0xff]   ;;  %v1080_v3 = vld [vmem:[%s1281_s11 + $0x8] sm:$0xff]   ;;  %v1081_v4 = vld [vmem:[%s1281_s11 + $0x10] sm:$0xff]   ;;  %s827_s7 = sshll.u32 %s234_s6, 4  ;;  %s1571_s12 = scalar_lea.hbm %s1644_s5, %s976_s25  ;;  %s1573_s7 = int_to_ptr.vmem [resolvable:$true] %s827_s7 }
  0x1b   : > { %999 = vmatprep.mubr.msk.bf16.mxu0 %vm368_vm1, %v1079_v2  ;;  %v1082_v5 = vld [vmem:[%s1281_s11 + $0x18] sm:$0xff]   ;;  %v1083_v6 = vld [vmem:[%s1281_s11 + $0x20] sm:$0xff]   ;;  %v1088_v8 = vld [vmem:[%s1281_s11 + $0x48] sm:$0xff]   ;;  %p1098_p13 = pneg %p1097_p12  ;;  %p1102_p0 = scmp.lt.s32.totalorder %s1565_s30, %s1100_s16 }
  0x1c   : > { %1000 = vmatmul.mubr.msk.bf16.vlgmr.msra.gmra.mrb[0].mxu0 %vm368_vm1, %v1080_v3  ;;  %v1087_v7 = vld [vmem:[%s1281_s11 + $0x40] sm:$0xff]   ;;  %v1089_v9 = vld [vmem:[%s1281_s11 + $0x50] sm:$0xff]   ;;  %v1084_v10 = vld [vmem:[%s1281_s11 + $0x28] sm:$0xff]  }
  0x1d   : > { %1003 = vmatprep.mubr.msk.bf16.mxu0 %vm368_vm1, %v1081_v4  ;;  %1015 = vmatprep.mubr.msk.bf16.mxu1 %vm368_vm1, %v1087_v7  ;;  %v1090_v11 = vld [vmem:[%s1281_s11 + $0x58] sm:$0xff]   ;;  %v1085_v12 = vld [vmem:[%s1281_s11 + $0x30] sm:$0xff]   ;;  %v1091_v13 = vld [vmem:[%s1281_s11 + $0x60] sm:$0xff]  }
  0x1e   : > { %1016 = vmatmul.mubr.msk.bf16.vlgmr.msra.gmra.mrb[0].mxu1 %vm368_vm1, %v1088_v8  ;;  %v1086_v14 = vld [vmem:[%s1281_s11 + $0x38] sm:$0xff]   ;;  %v1092_v15 = vld [vmem:[%s1281_s11 + $0x68] sm:$0xff]   ;;  %v1093_v16 = vld [vmem:[%s1281_s11 + $0x70] sm:$0xff]  }
  0x1f   : > { %1019 = vmatprep.mubr.msk.bf16.mxu1 %vm368_vm1, %v1089_v9  ;;  %v1094_v17 = vld [vmem:[%s1281_s11 + $0x78] sm:$0xff]  }
  0x24   : > { %1004 = vmatmul.mubr.msk.bf16.gmra.mrb[4].mxu0 %vm368_vm1, %v1082_v5 }
  0x25   : > { %1007 = vmatprep.mubr.msk.bf16.mxu0 %vm368_vm1, %v1083_v6 }
  0x26   : > { %1020 = vmatmul.mubr.msk.bf16.gmra.mrb[4].mxu1 %vm368_vm1, %v1090_v11 }
  0x27   : > { %1023 = vmatprep.mubr.msk.bf16.mxu1 %vm368_vm1, %v1091_v13 }
  0x2c   : > { %1008 = vmatmul.mubr.msk.bf16.gmra.mrb[8].mxu0 %vm368_vm1, %v1084_v10 }
  0x2d   : > { %1011 = vmatprep.mubr.msk.bf16.mxu0 %vm368_vm1, %v1085_v12 }
  0x2e   : > { %1024 = vmatmul.mubr.msk.bf16.gmra.mrb[8].mxu1 %vm368_vm1, %v1092_v15 }
  0x2f   : > { %1027 = vmatprep.mubr.msk.bf16.mxu1 %vm368_vm1, %v1093_v16 }
  0x34   : > { %1012 = vmatmul.mubr.msk.bf16.gmra.mrb[12].mxu0 %vm368_vm1, %v1086_v14 }
  0x36   : > { %1028 = vmatmul.mubr.msk.bf16.gmra.mrb[12].mxu1 %vm368_vm1, %v1094_v17 }
  0xef   : > { %v1001_v19 = vpop.f32.mrb[0].mxu0 }
  0xf0   : > { %v464_v20 = vadd.f32 %v1001_v19, %v1319_v18  ;;  %v455_v21 = vpop.f32.mrb[1].mxu0 }
  0xf1   : > { %v456_v22 = vadd.f32 %v1319_v18, %v455_v21  ;;  %v1002_v23 = vpop.f32.mrb[2].mxu0  ;;  %v1017_v38 = vpop.f32.mrb[0].mxu1 }
  0xf2   : > { %585 = vst.msk [vmem:[%s1324_s17 + $0x10] sm:$0xff] %vm582_vm2, %v464_v20  ;;  %v467_v24 = vadd.f32 %v1002_v23, %v1319_v18  ;;  %v458_v25 = vpop.f32.mrb[3].mxu0  ;;  %v688_v28 = vmul.f32 %v464_v20, %v464_v20  ;;  %v618_v34 = vsel %vm582_vm2, %v464_v20, 0.0  ;;  %v1345_v43 = vadd.f32 %v1017_v38, %v1319_v18  ;;  %v519_v44 = vpop.f32.mrb[1].mxu1 }
  0xf3   : > { %583 = vst.msk [vmem:[%s1324_s17] sm:$0xff] %vm582_vm2, %v456_v22  ;;  %v686_v26 = vmul.f32 %v456_v22, %v456_v22  ;;  %v459_v27 = vadd.f32 %v1319_v18, %v458_v25  ;;  %v615_v29 = vsel %vm582_vm2, %v456_v22, 0.0  ;;  %v1351_v49 = vadd.f32 %v1319_v18, %v519_v44  ;;  %v1018_v50 = vpop.f32.mrb[2].mxu1 }
  0xf4   : > { %586 = vst.msk [vmem:[%s1324_s17 + $0x18] sm:$0xff] %vm582_vm2, %v467_v24  ;;  %v689_v32 = vmul.f32 %v467_v24, %v467_v24  ;;  %v721_v45 = vsel %vm582_vm2, %v688_v28, 0.0  ;;  %v620_v46 = vsel %vm582_vm2, %v467_v24, 0.0  ;;  %601 = vst.msk [vmem:[%s1324_s17 + $0x90] sm:$0xff] %vm582_vm2, %v1345_v43  ;;  %v522_v55 = vpop.f32.mrb[3].mxu1  ;;  %v1375_v6 = vadd.f32 %v1018_v50, %v1319_v18 }
  0xf5   : > { %584 = vst.msk [vmem:[%s1324_s17 + $0x8] sm:$0xff] %vm582_vm2, %v459_v27  ;;  %v616_v30 = vsel %vm582_vm2, %v459_v27, 0.0  ;;  %v687_v31 = vmul.f32 %v459_v27, %v459_v27  ;;  %v718_v35 = vsel %vm582_vm2, %v686_v26, 0.0  ;;  %599 = vst.msk [vmem:[%s1324_s17 + $0x80] sm:$0xff] %vm582_vm2, %v1351_v49  ;;  %v1405_v38 = vadd.f32 %v1319_v18, %v522_v55 }
  0xf6   : > { %v617_v33 = vadd.f32 %v616_v30, %v615_v29  ;;  %v723_v51 = vsel %vm582_vm2, %v689_v32, 0.0  ;;  %602 = vst.msk [vmem:[%s1324_s17 + $0x98] sm:$0xff] %vm582_vm2, %v1375_v6 }
  0xf7   : > { %v719_v36 = vsel %vm582_vm2, %v687_v31, 0.0  ;;  %v1005_v37 = vpop.f32.mrb[4].mxu0  ;;  %600 = vst.msk [vmem:[%s1324_s17 + $0x88] sm:$0xff] %vm582_vm2, %v1405_v38 }
  0xf8   : > { %v619_v39 = vadd.f32 %v618_v34, %v617_v33  ;;  %v720_v40 = vadd.f32 %v719_v36, %v718_v35  ;;  %v480_v41 = vadd.f32 %v1005_v37, %v1319_v18  ;;  %v471_v42 = vpop.f32.mrb[5].mxu0 }
  0xf9   : > { %v472_v47 = vadd.f32 %v1319_v18, %v471_v42  ;;  %v1006_v48 = vpop.f32.mrb[6].mxu0  ;;  %v1021_v7 = vpop.f32.mrb[4].mxu1 }
  0xfa   : > { %v722_v52 = vadd.f32 %v721_v45, %v720_v40  ;;  %589 = vst.msk [vmem:[%s1324_s17 + $0x30] sm:$0xff] %vm582_vm2, %v480_v41  ;;  %v621_v53 = vadd.f32 %v620_v46, %v619_v39  ;;  %v474_v54 = vpop.f32.mrb[7].mxu0  ;;  %v483_v58 = vadd.f32 %v1006_v48, %v1319_v18  ;;  %v692_v0 = vmul.f32 %v480_v41, %v480_v41  ;;  %v535_v13 = vpop.f32.mrb[5].mxu1 }
  0xfb   : > { %587 = vst.msk [vmem:[%s1324_s17 + $0x20] sm:$0xff] %vm582_vm2, %v472_v47  ;;  %v622_v56 = vsel %vm582_vm2, %v472_v47, 0.0  ;;  %v690_v57 = vmul.f32 %v472_v47, %v472_v47  ;;  %v475_v59 = vadd.f32 %v1319_v18, %v474_v54  ;;  %v626_v4 = vsel %vm582_vm2, %v480_v41, 0.0  ;;  %v1384_v19 = vpop.f32.mrb[6].mxu1 }
  0xfc   : > { %v623_v60 = vadd.f32 %v622_v56, %v621_v53  ;;  %v724_v61 = vadd.f32 %v723_v51, %v722_v52  ;;  %590 = vst.msk [vmem:[%s1324_s17 + $0x38] sm:$0xff] %vm582_vm2, %v483_v58  ;;  %v693_v8 = vmul.f32 %v483_v58, %v483_v58  ;;  %v628_v14 = vsel %vm582_vm2, %v483_v58, 0.0  ;;  %v1390_v24 = vpop.f32.mrb[7].mxu1 }
  0xfd   : > { %v725_v62 = vsel %vm582_vm2, %v690_v57, 0.0  ;;  %588 = vst.msk [vmem:[%s1324_s17 + $0x28] sm:$0xff] %vm582_vm2, %v475_v59  ;;  %v624_v63 = vsel %vm582_vm2, %v475_v59, 0.0  ;;  %v691_v3 = vmul.f32 %v475_v59, %v475_v59  ;;  %v729_v20 = vsel %vm582_vm2, %v692_v0, 0.0 }
  0xfe   : > { %v726_v1 = vadd.f32 %v725_v62, %v724_v61  ;;  %v625_v2 = vadd.f32 %v624_v63, %v623_v60  ;;  %v731_v29 = vsel %vm582_vm2, %v693_v8, 0.0  ;;  %v1409_v42 = vadd.f32 %v1021_v7, %v1319_v18 }
  0xff   : > { %v1009_v5 = vpop.f32.mrb[8].mxu0  ;;  %v727_v10 = vsel %vm582_vm2, %v691_v3, 0.0  ;;  %v1412_v44 = vadd.f32 %v1319_v18, %v535_v13 }
 0x100   : > { %v627_v9 = vadd.f32 %v626_v4, %v625_v2  ;;  %v496_v11 = vadd.f32 %v1009_v5, %v1319_v18  ;;  %v487_v12 = vpop.f32.mrb[9].mxu0  ;;  %v728_v15 = vadd.f32 %v727_v10, %v726_v1  ;;  %605 = vst.msk [vmem:[%s1324_s17 + $0xb0] sm:$0xff] %vm582_vm2, %v1409_v42 }
 0x101   : > { %v488_v16 = vadd.f32 %v1319_v18, %v487_v12  ;;  %v1010_v17 = vpop.f32.mrb[10].mxu0  ;;  %v1025_v45 = vpop.f32.mrb[8].mxu1  ;;  %603 = vst.msk [vmem:[%s1324_s17 + $0xa0] sm:$0xff] %vm582_vm2, %v1412_v44 }
 0x102   : > { %593 = vst.msk [vmem:[%s1324_s17 + $0x50] sm:$0xff] %vm582_vm2, %v496_v11  ;;  %v629_v21 = vadd.f32 %v628_v14, %v627_v9  ;;  %v499_v22 = vadd.f32 %v1010_v17, %v1319_v18  ;;  %v490_v23 = vpop.f32.mrb[11].mxu0  ;;  %v730_v25 = vadd.f32 %v729_v20, %v728_v15  ;;  %v634_v35 = vsel %vm582_vm2, %v496_v11, 0.0  ;;  %v551_v51 = vpop.f32.mrb[9].mxu1 }
 0x103   : > { %591 = vst.msk [vmem:[%s1324_s17 + $0x40] sm:$0xff] %vm582_vm2, %v488_v16  ;;  %v630_v26 = vsel %vm582_vm2, %v488_v16, 0.0  ;;  %v694_v27 = vmul.f32 %v488_v16, %v488_v16  ;;  %v491_v28 = vadd.f32 %v1319_v18, %v490_v23  ;;  %v696_v36 = vmul.f32 %v496_v11, %v496_v11  ;;  %v1026_v56 = vpop.f32.mrb[10].mxu1 }
 0x104   : > { %v631_v30 = vadd.f32 %v630_v26, %v629_v21  ;;  %594 = vst.msk [vmem:[%s1324_s17 + $0x58] sm:$0xff] %vm582_vm2, %v499_v22  ;;  %v732_v31 = vadd.f32 %v731_v29, %v730_v25  ;;  %v697_v46 = vmul.f32 %v499_v22, %v499_v22  ;;  %v636_v52 = vsel %vm582_vm2, %v499_v22, 0.0  ;;  %v554_v61 = vpop.f32.mrb[11].mxu1 }
 0x105   : > { %v733_v32 = vsel %vm582_vm2, %v694_v27, 0.0  ;;  %592 = vst.msk [vmem:[%s1324_s17 + $0x48] sm:$0xff] %vm582_vm2, %v491_v28  ;;  %v632_v33 = vsel %vm582_vm2, %v491_v28, 0.0  ;;  %v695_v34 = vmul.f32 %v491_v28, %v491_v28  ;;  %v737_v57 = vsel %vm582_vm2, %v696_v36, 0.0 }
 0x106   : > { %v633_v37 = vadd.f32 %v632_v33, %v631_v30  ;;  %v734_v39 = vadd.f32 %v733_v32, %v732_v31  ;;  %v739_v2 = vsel %vm582_vm2, %v697_v46, 0.0  ;;  %v646_v11 = vsel %vm582_vm2, %v1351_v49, 0.0 }
 0x107   : > { %v735_v40 = vsel %vm582_vm2, %v695_v34, 0.0  ;;  %v1013_v41 = vpop.f32.mrb[12].mxu0  ;;  %v702_v15 = vmul.f32 %v1351_v49, %v1351_v49  ;;  %v1449_v21 = vadd.f32 %v1384_v19, %v1319_v18  ;;  %v539_v22 = vadd.f32 %v1319_v18, %v1390_v24 }
 0x108   : > { %v635_v47 = vadd.f32 %v634_v35, %v633_v37  ;;  %v512_v48 = vadd.f32 %v1013_v41, %v1319_v18  ;;  %v503_v50 = vpop.f32.mrb[13].mxu0  ;;  %v736_v53 = vadd.f32 %v735_v40, %v734_v39  ;;  %v1455_v27 = vadd.f32 %v1025_v45, %v1319_v18 }
 0x109   : > { %v504_v54 = vadd.f32 %v1319_v18, %v503_v50  ;;  %v1014_v55 = vpop.f32.mrb[14].mxu0  ;;  %v1029_v16 = vpop.f32.mrb[12].mxu1  ;;  %v552_v49 = vadd.f32 %v1319_v18, %v551_v51  ;;  %606 = vst.msk [vmem:[%s1324_s17 + $0xb8] sm:$0xff] %vm582_vm2, %v1449_v21  ;;  %604 = vst.msk [vmem:[%s1324_s17 + $0xa8] sm:$0xff] %vm582_vm2, %v539_v22  ;;  %v749_v33 = vsel %vm582_vm2, %v702_v15, 0.0  ;;  %v703_v34 = vmul.f32 %v1405_v38, %v1405_v38 }
 0x10a   : > { %597 = vst.msk [vmem:[%s1324_s17 + $0x70] sm:$0xff] %vm582_vm2, %v512_v48  ;;  %v637_v58 = vadd.f32 %v636_v52, %v635_v47  ;;  %v515_v59 = vadd.f32 %v1014_v55, %v1319_v18  ;;  %v506_v60 = vpop.f32.mrb[15].mxu0  ;;  %v738_v62 = vadd.f32 %v737_v57, %v736_v53  ;;  %v700_v9 = vmul.f32 %v512_v48, %v512_v48  ;;  %v567_v23 = vpop.f32.mrb[13].mxu1 }
 0x10b   : > { %595 = vst.msk [vmem:[%s1324_s17 + $0x60] sm:$0xff] %vm582_vm2, %v504_v54  ;;  %v638_v63 = vsel %vm582_vm2, %v504_v54, 0.0  ;;  %v698_v0 = vmul.f32 %v504_v54, %v504_v54  ;;  %v507_v1 = vadd.f32 %v1319_v18, %v506_v60  ;;  %v642_v12 = vsel %vm582_vm2, %v512_v48, 0.0  ;;  %v1030_v28 = vpop.f32.mrb[14].mxu1  ;;  %609 = vst.msk [vmem:[%s1324_s17 + $0xd0] sm:$0xff] %vm582_vm2, %v1455_v27 }
 0x10c   : > { %v639_v3 = vadd.f32 %v638_v63, %v637_v58  ;;  %598 = vst.msk [vmem:[%s1324_s17 + $0x78] sm:$0xff] %vm582_vm2, %v515_v59  ;;  %v740_v4 = vadd.f32 %v739_v2, %v738_v62  ;;  %v701_v17 = vmul.f32 %v515_v59, %v515_v59  ;;  %v644_v25 = vsel %vm582_vm2, %v515_v59, 0.0  ;;  %v570_v19 = vpop.f32.mrb[15].mxu1  ;;  %607 = vst.msk [vmem:[%s1324_s17 + $0xc0] sm:$0xff] %vm582_vm2, %v552_v49 }
 0x10d   : > { %v741_v5 = vsel %vm582_vm2, %v698_v0, 0.0  ;;  %596 = vst.msk [vmem:[%s1324_s17 + $0x68] sm:$0xff] %vm582_vm2, %v507_v1  ;;  %v640_v7 = vsel %vm582_vm2, %v507_v1, 0.0  ;;  %v699_v8 = vmul.f32 %v507_v1, %v507_v1  ;;  %v745_v29 = vsel %vm582_vm2, %v700_v9, 0.0 }
 0x10e   : > { %v641_v10 = vadd.f32 %v640_v7, %v639_v3  ;;  %v742_v13 = vadd.f32 %v741_v5, %v740_v4  ;;  %v747_v31 = vsel %vm582_vm2, %v701_v17, 0.0  ;;  %v648_v36 = vsel %vm582_vm2, %v1405_v38, 0.0 }
 0x10f   : > { %v743_v14 = vsel %vm582_vm2, %v699_v8, 0.0  ;;  %v1476_v37 = vadd.f32 %v1026_v56, %v1319_v18  ;;  %v704_v39 = vmul.f32 %v1345_v43, %v1345_v43  ;;  %v555_v41 = vadd.f32 %v1319_v18, %v554_v61 }
 0x110   : > { %v643_v20 = vadd.f32 %v642_v12, %v641_v10  ;;  %v744_v26 = vadd.f32 %v743_v14, %v742_v13  ;;  %v1482_v45 = vadd.f32 %v1029_v16, %v1319_v18  ;;  %v650_v46 = vsel %vm582_vm2, %v1345_v43, 0.0 }
 0x111   : > { %v705_v38 = vmul.f32 %v1375_v6, %v1375_v6  ;;  %610 = vst.msk [vmem:[%s1324_s17 + $0xd8] sm:$0xff] %vm582_vm2, %v1476_v37  ;;  %v568_v48 = vadd.f32 %v1319_v18, %v567_v23  ;;  %v751_v51 = vsel %vm582_vm2, %v703_v34, 0.0  ;;  %v706_v52 = vmul.f32 %v1412_v44, %v1412_v44  ;;  %608 = vst.msk [vmem:[%s1324_s17 + $0xc8] sm:$0xff] %vm582_vm2, %v555_v41 }
 0x112   : > { %v645_v30 = vadd.f32 %v644_v25, %v643_v20  ;;  %v746_v24 = vadd.f32 %v745_v29, %v744_v26  ;;  %613 = vst.msk [vmem:[%s1324_s17 + $0xf0] sm:$0xff] %vm582_vm2, %v1482_v45  ;;  %v652_v43 = vsel %vm582_vm2, %v1375_v6, 0.0  ;;  %v654_v54 = vsel %vm582_vm2, %v1412_v44, 0.0 }
 0x113   : > { %v716_v55 = vmul.f32 %v1482_v45, %v1482_v45  ;;  %611 = vst.msk [vmem:[%s1324_s17 + $0xe0] sm:$0xff] %vm582_vm2, %v568_v48  ;;  %v753_v56 = vsel %vm582_vm2, %v704_v39, 0.0  ;;  %v579_v58 = vadd.f32 %v1030_v28, %v1319_v18  ;;  %v755_v59 = vsel %vm582_vm2, %v705_v38, 0.0 }
 0x114   : > { %v647_v32 = vadd.f32 %v646_v11, %v645_v30  ;;  %v748_v35 = vadd.f32 %v747_v31, %v746_v24  ;;  %v571_v61 = vadd.f32 %v1319_v18, %v570_v19  ;;  %v757_v44 = vsel %vm582_vm2, %v706_v52, 0.0 }
 0x115   : > { %v777_v6 = vsel %vm582_vm2, %v716_v55, 0.0  ;;  %v707_v63 = vmul.f32 %v539_v22, %v539_v22  ;;  %614 = vst.msk [vmem:[%s1324_s17 + $0xf8] sm:$0xff] %vm582_vm2, %v579_v58  ;;  %v717_v0 = vmul.f32 %v579_v58, %v579_v58  ;;  %v656_v2 = vsel %vm582_vm2, %v539_v22, 0.0 }
 0x116   : > { %v649_v40 = vadd.f32 %v648_v36, %v647_v32  ;;  %v750_v47 = vadd.f32 %v749_v33, %v748_v35  ;;  %612 = vst.msk [vmem:[%s1324_s17 + $0xe8] sm:$0xff] %vm582_vm2, %v571_v61  ;;  %v708_v3 = vmul.f32 %v1409_v42, %v1409_v42  ;;  %v658_v18 = vsel %vm582_vm2, %v1409_v42, 0.0  ;;  %s1101_s17 = scalar_lea.vmem %s1100_s16, 32 }
 0x117   : > { %v779_v5 = vsel %vm582_vm2, %v717_v0, 0.0  ;;  %v709_v8 = vmul.f32 %v1449_v21, %v1449_v21  ;;  %v759_v10 = vsel %vm582_vm2, %v707_v63, 0.0  ;;  %v710_v11 = vmul.f32 %v552_v49, %v552_v49  ;;  %p1103_p1 = scmp.lt.s32.totalorder %s1101_s17, %s1095_s14 }
 0x118   : > { %v651_v50 = vadd.f32 %v650_v46, %v649_v40  ;;  %v752_v53 = vadd.f32 %v751_v51, %v750_v47  ;;  %v660_v12 = vsel %vm582_vm2, %v1449_v21, 0.0  ;;  %v662_v14 = vsel %vm582_vm2, %v552_v49, 0.0 }
 0x119   : > { %v761_v15 = vsel %vm582_vm2, %v708_v3, 0.0  ;;  %v763_v42 = vsel %vm582_vm2, %v709_v8, 0.0  ;;  %v765_v22 = vsel %vm582_vm2, %v710_v11, 0.0  ;;  %v711_v23 = vmul.f32 %v555_v41, %v555_v41  ;;  %p1104_p2 = por %p1103_p1, %p1102_p0 }
 0x11a   : > { %v653_v57 = vadd.f32 %v652_v43, %v651_v50  ;;  %v754_v60 = vadd.f32 %v753_v56, %v752_v53  ;;  %v664_v26 = vsel %vm582_vm2, %v555_v41, 0.0  ;;  %v712_v28 = vmul.f32 %v1455_v27, %v1455_v27 }
 0x11b   : > { %v666_v49 = vsel %vm582_vm2, %v1455_v27, 0.0  ;;  %v713_v30 = vmul.f32 %v1476_v37, %v1476_v37  ;;  %v767_v24 = vsel %vm582_vm2, %v711_v23, 0.0  ;;  %v714_v31 = vmul.f32 %v568_v48, %v568_v48  ;;  %p1105_p3 = pnand %p1104_p2, %p1098_p13 }
 0x11c   : > { %v655_v62 = vadd.f32 %v654_v54, %v653_v57  ;;  %v756_v1 = vadd.f32 %v755_v59, %v754_v60  ;;  %v668_v32 = vsel %vm582_vm2, %v1476_v37, 0.0  ;;  %v670_v34 = vsel %vm582_vm2, %v568_v48, 0.0 }
 0x11d   : > { %v769_v35 = vsel %vm582_vm2, %v712_v28, 0.0  ;;  %v771_v27 = vsel %vm582_vm2, %v713_v30, 0.0  ;;  %v773_v41 = vsel %vm582_vm2, %v714_v31, 0.0  ;;  %v715_v46 = vmul.f32 %v571_v61, %v571_v61 }
 0x11e   : > { %v657_v4 = vadd.f32 %v656_v2, %v655_v62  ;;  %v758_v7 = vadd.f32 %v757_v44, %v756_v1  ;;  %v672_v38 = vsel %vm582_vm2, %v571_v61, 0.0  ;;  %v674_v37 = vsel %vm582_vm2, %v1482_v45, 0.0 }
 0x11f   : > { %v775_v52 = vsel %vm582_vm2, %v715_v46, 0.0  ;;  %v676_v43 = vsel %vm582_vm2, %v579_v58, 0.0 }
 0x120   : > { %v659_v9 = vadd.f32 %v658_v18, %v657_v4  ;;  %v760_v13 = vadd.f32 %v759_v10, %v758_v7 }
 0x122   : > { %v661_v16 = vadd.f32 %v660_v12, %v659_v9  ;;  %v762_v17 = vadd.f32 %v761_v15, %v760_v13 }
 0x124   : > { %v663_v20 = vadd.f32 %v662_v14, %v661_v16  ;;  %v764_v25 = vadd.f32 %v763_v42, %v762_v17 }
 0x126   : > { %v665_v21 = vadd.f32 %v664_v26, %v663_v20  ;;  %v766_v29 = vadd.f32 %v765_v22, %v764_v25 }
 0x128   : > { %v667_v19 = vadd.f32 %v666_v49, %v665_v21  ;;  %v768_v33 = vadd.f32 %v767_v24, %v766_v29 }
 0x12a   : > { %v669_v36 = vadd.f32 %v668_v32, %v667_v19  ;;  %v770_v39 = vadd.f32 %v769_v35, %v768_v33 }
 0x12c   : > { %v671_v40 = vadd.f32 %v670_v34, %v669_v36  ;;  %v772_v47 = vadd.f32 %v771_v27, %v770_v39 }
 0x12e   : > { %v673_v50 = vadd.f32 %v672_v38, %v671_v40  ;;  %v774_v48 = vadd.f32 %v773_v41, %v772_v47 }
 0x130   : > { %v675_v51 = vadd.f32 %v674_v37, %v673_v50  ;;  %v776_v53 = vadd.f32 %v775_v52, %v774_v48 }
 0x132   : > { %v677_v54 = vadd.f32 %v676_v43, %v675_v51  ;;  %v778_v55 = vadd.f32 %v777_v6, %v776_v53 }
 0x134   : > { %v678_v56 = vrot.slane %v677_v54, 4  ;;  %v780_v57 = vadd.f32 %v779_v5, %v778_v55 }
 0x136   : > { %v679_v59 = vadd.f32 %v678_v56, %v677_v54  ;;  %v781_v60 = vrot.slane %v780_v57, 4 }
 0x138   : > { %v680_v45 = vrot.slane %v679_v59, 2  ;;  %v782_v61 = vadd.f32 %v781_v60, %v780_v57 }
 0x13a   : > { %v681_v62 = vadd.f32 %v680_v45, %v679_v59  ;;  %v783_v58 = vrot.slane %v782_v61, 2 }
 0x13c   : > { %v682_v44 = vrot.slane %v681_v62, 1  ;;  %v784_v6 = vadd.f32 %v783_v58, %v782_v61 }
 0x13e   : > { %v683_v63 = vadd.f32 %v682_v44, %v681_v62  ;;  %v785_v0 = vrot.slane %v784_v6, 1 }
 0x140   : > { %685 = vst.msk [vmem:[%s228_s26] sm:$0x1] %vm684_vm3, %v683_v63 }
 0x141   : > { %1108 = shalt.err (!%p1105_p3)
}
 0x142   : > { %s1109_s25 = scalar_lea.hbm %s1563_s10, 16  ;;  %s1113_s9 = scalar_lea.hbm %s1643_s4, 32 }
 0x143   : > { %p1110_p4 = scmp.ne.s32.totalorder %s1563_s10, %s1109_s25  ;;  %p1114_p9 = scmp.lt.u32.totalorder %s1563_s10, %s1643_s4 }
 0x144   : > { %p1115_p10 = scmp.lt.u32.totalorder %s1113_s9, %s1109_s25  ;;  %p1117_p12 = scmp.lt.u32.totalorder %s1109_s25, %s1563_s10 }
 0x145   : > { %p1111_p7 = pnand %p1110_p4, %p1261_p5 }
 0x146   : > { %p1116_p11 = por %p1115_p10, %p1114_p9 }
 0x147   : > { %p1112_p8 = pneg %p1111_p7 }
 0x148   : > { %p1118_p13 = por %p1117_p12, %p1116_p11 }
 0x14a   : > { %p1119_p0 = pnand %p1118_p13, %p1112_p8 }
 0x14c   : > { %1122 = shalt.err (!%p1119_p0)
}
 0x14d   : > { %1035 = dma.vmem_to_hbm [thread:$0]  (%p1261_p5), %s1565_s30, 16, %s1563_s10, %s794_s13   ;;  %v786_v1 = vadd.f32 %v785_v0, %v784_v6 }
 0x14e   : > { %s798_s14 = scalar_lea.sflag [#allocation5], %s1553_s23  ;;  %s1123_s15 = scalar_lea.vmem %s1573_s7, 16 }
 0x14f   : > { %787 = vst.msk [vmem:[%s234_s6] sm:$0x1] %vm684_vm3, %v786_v1  ;;  %p1124_p1 = scmp.ne.s32.totalorder %s1573_s7, %s1123_s15  ;;  %s1192_s16 = smov [#allocation4]  }
 0x150   : > { %s1127_s17 = sshll.u32 %s1192_s16, 4  ;;  %s1128_s17 = int_to_ptr.vmem [resolvable:$false] %s1127_s17 }
 0x151   : > { %p1125_p2 = pnand %p1124_p1, %p1261_p5  ;;  %s1129_s25 = scalar_lea.vmem %s1128_s17, 32 }
 0x152   : > { %p1130_p4 = scmp.lt.s32.totalorder %s1573_s7, %s1128_s17  ;;  %p1131_p7 = scmp.lt.s32.totalorder %s1129_s25, %s1123_s15 }
 0x153   : > { %p1126_p3 = pneg %p1125_p2 }
 0x154   : > { %p1132_p8 = por %p1131_p7, %p1130_p4 }
 0x156   : > { %p1133_p9 = pnand %p1132_p8, %p1126_p3 }
 0x158   : > { %1136 = shalt.err (!%p1133_p9)
}
 0x159   : > { %s1137_s23 = scalar_lea.hbm %s1571_s12, 16  ;;  %s1141_s10 = scalar_lea.hbm %s1644_s5, 32 }
 0x15a   : > { %p1138_p10 = scmp.ne.s32.totalorder %s1571_s12, %s1137_s23  ;;  %p1142_p13 = scmp.lt.u32.totalorder %s1571_s12, %s1644_s5 }
 0x15b   : > { %p1143_p0 = scmp.lt.u32.totalorder %s1141_s10, %s1137_s23  ;;  %p1145_p2 = scmp.lt.u32.totalorder %s1137_s23, %s1571_s12 }
 0x15c   : > { %p1139_p11 = pnand %p1138_p10, %p1261_p5 }
 0x15d   : > { %p1144_p1 = por %p1143_p0, %p1142_p13 }
 0x15e   : > { %p1140_p12 = pneg %p1139_p11 }
 0x15f   : > { %p1146_p3 = por %p1145_p2, %p1144_p1 }
 0x161   : > { %p1147_p4 = pnand %p1146_p3, %p1140_p12 }
 0x163   : > { %1150 = shalt.err (!%p1147_p4)
}
 0x164   : > { %1036 = dma.vmem_to_hbm [thread:$0]  (%p1261_p5), %s1573_s7, 16, %s1571_s12, %s798_s14  }
 0x165 PF: > { %p1046_p7 = scmp.ge.s32.totalorder %s1189_s21, 2  ;;  %s847_s8 = sand.u32 1, %s1177_s18  }
 0x166   : > { %s848_s9 = scalar_lea.sflag [#allocation3], %s847_s8 }
 0x167   : > { %p1040_p8 = pnand %p1046_p7, %p1265_p6 }
 0x169   : > { %1168 = dma.done.wait (!%p1040_p8), %s848_s9, 16  }
 0x16a   : > { %1170 = vsyncadd (!%p1040_p8), %s848_s9, 4294967280  ;;  %s856_s22 = scalar_lea.sflag [#allocation5], %s847_s8 }
 0x16b   : > { %1172 = dma.done.wait (!%p1040_p8), %s856_s22, 16  }
 0x16c   : > { %1174 = vsyncadd (!%p1040_p8), %s856_s22, 4294967280  ;;  %p19_p5 = scmp.ge.s32.totalorder %s1248_s24, 4   ;;  %s1647_s18 = smov %s1181_s19 }
 0x16d   : > { %s1648_s19 = smov %s1185_s20  ;;  %s1649_s20 = smov %s1259_s27 }
 0x16e   : > { %s1650_s21 = smov %s1248_s24  ;;  %21 = sbr.rel (!%p19_p5) target bundleno = 5 (0x5), region = 96 }
 0x175   :  { %860 = vsyncpa [#allocation3], 1 }
 0x176   :  { %862 = vsyncpa [#allocation3 + $0x1], 1 }
 0x177   :  { %863 = vsyncpa [#allocation5], 1 }
 0x178   :  { %865 = vsyncpa [#allocation5 + $0x1], 1 }

</bundles_post_ra>
